<compile_context>
chip_gen: v7x
topology: tpu7x:2x2x1
jax: 0.10.0
libtpu: 0.0.40
codegen_flags: <defaults>
</compile_context>

<pallas_src>
import functools

import jax
import jax.numpy as jnp
from jax.experimental import pallas as pl
from jax.experimental.pallas import tpu as pltpu


# ---------------------------------------------------------------------------
# Hardware-aware sizing helpers
# ---------------------------------------------------------------------------
def _cdiv(a, b):
    return -(-a // b)


def _vmem_capacity_bytes():
    """Per-core VMEM capacity; conservative 64 MiB fallback (v7x-safe)."""
    try:
        info = pltpu.get_tpu_info()
        for name in ("vmem_capacity_bytes", "vmem_bytes", "vmem_size_bytes"):
            v = getattr(info, name, None)
            if v:
                return int(v)
    except Exception:
        pass
    return 64 << 20


def _pick_hw_tile(hw, stream_bytes_per_lane, *, target_bytes, max_lanes,
                  override=None):
    """Lane-axis (HW) tile: a multiple of 128, or the full HW extent."""
    if override is not None:
        t = max(1, int(override))
    else:
        t = target_bytes // max(1, stream_bytes_per_lane)
    t = min(int(t), int(max_lanes))
    if t >= hw:
        return hw
    t = max(128, (t // 128) * 128)
    return hw if t >= hw else t


def _shrink_tile(t):
    nt = max(128, ((t // 2) // 128) * 128)
    return t if nt >= t else nt


def _split_and_blocks(hw, tile, n_batch):
    """HW block count, TensorCore split factor, and blocks per split."""
    k = _cdiv(hw, tile)
    s = 2 if (n_batch == 1 and k >= 2) else 1   # dual-TC split when N == 1
    k_pp = _cdiv(k, s)
    return k, s, k_pp


def _make_x_index_map(k_per_split, k_total, overflow):
    """x index_map over grid (n, p, k); clamp the HW-block index when the
    split creates overflow steps (they are fully masked in the kernel)."""
    if overflow:
        return lambda n, p, k: (n, 0, jnp.minimum(p * k_per_split + k,
                                                  k_total - 1))
    return lambda n, p, k: (n, 0, p * k_per_split + k)


# ---------------------------------------------------------------------------
# In-kernel accumulation helper
# ---------------------------------------------------------------------------
def _accumulate_tile(acc_ref, get_chunk, *, g, tile, hw, n_full, need_mask):
    """Accumulate one (R, tile) HW tile into the (R, 128) f32 accumulator.

    get_chunk(start, width) -> (R, width) lane-slice of the current tile.
    Full tiles are plain VALU adds; only ragged / overflow grid steps pay for
    the iota + select masking (runtime-gated with pl.when).
    """
    nchunks = tile // 128
    rem = tile - nchunks * 128

    def add_tile(apply_mask):
        def chunk(start, width):
            c = get_chunk(start, width)
            if apply_mask:
                lane = (jax.lax.broadcasted_iota(jnp.int32, c.shape, 1)
                        + (g * tile + start))
                c = jnp.where(lane < hw, c, jnp.zeros_like(c))
            return c.astype(jnp.float32)

        if nchunks:
            acc = acc_ref[...]
            for j in range(nchunks):                   # static, unrolled
                acc = acc + chunk(j * 128, 128)
            acc_ref[...] = acc
        if rem:                                        # only when tile == HW
            acc_ref[:, :rem] = acc_ref[:, :rem] + chunk(nchunks * 128, rem)

    if not need_mask:
        add_tile(False)
        return

    @pl.when(g < n_full)
    def _full():
        add_tile(False)

    @pl.when(g >= n_full)
    def _ragged_or_overflow():
        add_tile(True)


# ---------------------------------------------------------------------------
# Kernels
# ---------------------------------------------------------------------------
def _gavp_pool_kernel(x_ref, o_ref, acc_ref, *, hw, tile, k_per_split,
                      n_full, need_mask):
    """Global average pool, HW tiled on the lane axis.

    x_ref  : (1, C, T)      current HW tile of one batch element
    o_ref  : (1, 1, C, 1)   f32 per-(batch, split) partial average
    acc_ref: (C, 128) f32   lane-wide running sum
    """
    p = pl.program_id(1)
    k = pl.program_id(2)
    g = p * k_per_split + k                      # global HW-block index

    @pl.when(k == 0)
    def _init():
        acc_ref[...] = jnp.zeros_like(acc_ref)

    _accumulate_tile(acc_ref, lambda start, width: x_ref[0, :, start:start + width],
                     g=g, tile=tile, hw=hw, n_full=n_full, need_mask=need_mask)

    @pl.when(k == k_per_split - 1)
    def _finalize():
        total = jnp.sum(acc_ref[...], axis=1, keepdims=True)   # one XLU pass
        o_ref[0, 0] = total * (1.0 / hw)


def _gavp_dr_kernel(x_ref, w_ref, b_ref, o_ref, acc_ref, *, hw, tile,
                    k_per_split, n_full, need_mask):
    """1x1 conv (MXU) + folded eval-mode BN + ReLU + global average pool.

    x_ref  : (1, C, T)      current HW tile of one batch element
    w_ref  : (drp, C)       conv weight with BN scale folded in (bf16 or f32)
    b_ref  : (drp, 1) f32   folded BN bias
    o_ref  : (1, 1, drp, 1) f32 per-(batch, split) partial average
    acc_ref: (drp, 128) f32 lane-wide running sum
    """
    p = pl.program_id(1)
    k = pl.program_id(2)
    g = p * k_per_split + k

    @pl.when(k == 0)
    def _init():
        acc_ref[...] = jnp.zeros_like(acc_ref)

    w = w_ref[...]                                   # (drp, C), grid-invariant
    x = x_ref[0]                                     # (C, T)
    if x.dtype != w.dtype:
        x = x.astype(w.dtype)                        # bf16 MXU operands for f32 in
    y = jnp.dot(w, x, preferred_element_type=jnp.float32)   # (drp, T) on MXU
    y = jnp.maximum(y + b_ref[...], 0.0)             # folded BN bias + ReLU

    _accumulate_tile(acc_ref, lambda start, width: y[:, start:start + width],
                     g=g, tile=tile, hw=hw, n_full=n_full, need_mask=need_mask)

    @pl.when(k == k_per_split - 1)
    def _finalize():
        total = jnp.sum(acc_ref[...], axis=1, keepdims=True)
        o_ref[0, 0] = total * (1.0 / hw)


# ---------------------------------------------------------------------------
# Wrapper
# ---------------------------------------------------------------------------
def gavp_forward(x_nchw, params=None, hw_tile=None, prefer_bf16_matmul=True):
    """Forward pass of GAvP.

    x_nchw : (N, C, H, W)
    params : None (dr disabled) or dict with
             conv_w (dr, C, 1, 1), bn_gamma (dr,), bn_beta (dr,),
             bn_mean (dr,), bn_var (dr,), eps (float)
    hw_tile: optional HW-tile override (testing / tuning).
    returns: (N, C_out, 1, 1) in the input dtype.
    """
    N, C, H, W = x_nchw.shape
    HW = H * W
    x = x_nchw.reshape(N, C, HW)            # free reshape; no transpose
    itemsize = jnp.dtype(x.dtype).itemsize

    vmem_cap = _vmem_capacity_bytes()
    vmem_budget = max(16 << 20, vmem_cap - (8 << 20))          # Mosaic headroom
    target_bytes = max(4 << 20, min(16 << 20, vmem_cap // 8))  # ~8 MiB v7x, 16 MiB v5e/v6e
    c_pad8 = ((C + 7) // 8) * 8

    # ------------------------- plain global average pool --------------------
    if params is None:
        def need_bytes(t):
            t_pad = ((max(t, 1) + 127) // 128) * 128
            x_bufs = 2 * c_pad8 * t_pad * itemsize              # double-buffered tile
            acc = c_pad8 * 128 * 4                              # (C,128) f32 scratch
            out = 2 * c_pad8 * 128 * 4                          # lane-padded out block
            return x_bufs + acc + out + (2 << 20)

        T = _pick_hw_tile(HW, C * itemsize, target_bytes=target_bytes,
                          max_lanes=8192, override=hw_tile)
        while need_bytes(T) > vmem_budget:
            nt = _shrink_tile(T)
            if nt == T:
                break
            T = nt

        K, S, K_pp = _split_and_blocks(HW, T, N)
        n_full = HW // T
        need_mask = (S * K_pp * T) > HW
        x_map = _make_x_index_map(K_pp, K, overflow=(S * K_pp > K))
        vmem_limit = int(min(vmem_budget, max(need_bytes(T), 32 << 20)))

        kern = functools.partial(_gavp_pool_kernel, hw=HW, tile=T,
                                 k_per_split=K_pp, n_full=n_full,
                                 need_mask=need_mask)
        out = pl.pallas_call(
            kern,
            out_shape=jax.ShapeDtypeStruct((N, S, C, 1), jnp.float32),
            grid_spec=pltpu.PrefetchScalarGridSpec(
                num_scalar_prefetch=0,
                grid=(N, S, K_pp),
                in_specs=[pl.BlockSpec((1, C, T), x_map)],
                out_specs=pl.BlockSpec((1, 1, C, 1), lambda n, p, k: (n, p, 0, 0)),
                scratch_shapes=[pltpu.VMEM((C, 128), jnp.float32)],
            ),
            compiler_params=pltpu.CompilerParams(
                dimension_semantics=("parallel", "parallel", "arbitrary"),
                vmem_limit_bytes=vmem_limit),
        )(x)
        res = out.sum(axis=1)                      # combine per-split partials
        return res.reshape(N, C, 1, 1).astype(x_nchw.dtype)

    # ------------- dimension reduction: fold eval-mode BN into conv ---------
    conv_w = params["conv_w"]
    dr = conv_w.shape[0]
    gamma = params["bn_gamma"].astype(jnp.float32)
    beta = params["bn_beta"].astype(jnp.float32)
    mean = params["bn_mean"].astype(jnp.float32)
    var = params["bn_var"].astype(jnp.float32)
    eps = params["eps"]

    scale = gamma / jnp.sqrt(var + eps)                             # (dr,)
    compute_dtype = (jnp.bfloat16
                     if (prefer_bf16_matmul and x.dtype == jnp.float32)
                     else x.dtype)
    cast_in_kernel = jnp.dtype(compute_dtype) != jnp.dtype(x.dtype)
    w_eff = (conv_w.reshape(dr, C).astype(jnp.float32)
             * scale[:, None]).astype(compute_dtype)                # (dr, C)
    b_eff = (beta - mean * scale).reshape(dr, 1)                    # (dr, 1) f32

    drp = ((dr + 7) // 8) * 8          # pad out-channels to a sublane multiple
    if drp != dr:
        w_eff = jnp.pad(w_eff, ((0, drp - dr), (0, 0)))
        b_eff = jnp.pad(b_eff, ((0, drp - dr), (0, 0)))

    w_itemsize = jnp.dtype(compute_dtype).itemsize
    c_pad128 = ((C + 127) // 128) * 128

    def need_bytes(t):
        t_pad = ((max(t, 1) + 127) // 128) * 128
        x_bufs = 2 * c_pad8 * t_pad * itemsize
        x_cast = c_pad8 * t_pad * w_itemsize if cast_in_kernel else 0
        y_tmp = drp * t_pad * 4                                     # f32 conv output
        w_bufs = 2 * drp * c_pad128 * w_itemsize
        b_bufs = 2 * drp * 128 * 4
        acc = drp * 128 * 4
        out = 2 * drp * 128 * 4
        return x_bufs + x_cast + y_tmp + w_bufs + b_bufs + acc + out + (2 << 20)

    # Cap T harder here so the (drp, T) f32 intermediate stays small (#7).
    T = _pick_hw_tile(HW, C * itemsize, target_bytes=target_bytes,
                      max_lanes=4096, override=hw_tile)
    while need_bytes(T) > vmem_budget:
        nt = _shrink_tile(T)
        if nt == T:
            break
        T = nt

    K, S, K_pp = _split_and_blocks(HW, T, N)
    n_full = HW // T
    need_mask = (S * K_pp * T) > HW
    x_map = _make_x_index_map(K_pp, K, overflow=(S * K_pp > K))
    vmem_limit = int(min(vmem_budget, max(need_bytes(T), 32 << 20)))

    kern = functools.partial(_gavp_dr_kernel, hw=HW, tile=T, k_per_split=K_pp,
                             n_full=n_full, need_mask=need_mask)
    out = pl.pallas_call(
        kern,
        out_shape=jax.ShapeDtypeStruct((N, S, drp, 1), jnp.float32),
        grid_spec=pltpu.PrefetchScalarGridSpec(
            num_scalar_prefetch=0,
            grid=(N, S, K_pp),
            in_specs=[
                pl.BlockSpec((1, C, T), x_map),
                # Grid-invariant weight/bias (constant index_map): DMA'd once.
                # TODO(synk): mark these pipeline_mode=pl.Buffered(1) once
                # single-buffering is robust across jax versions, to reclaim
                # drp*C bytes of VMEM headroom on v7x.
                pl.BlockSpec((drp, C), lambda n, p, k: (0, 0)),
                pl.BlockSpec((drp, 1), lambda n, p, k: (0, 0)),
            ],
            out_specs=pl.BlockSpec((1, 1, drp, 1), lambda n, p, k: (n, p, 0, 0)),
            scratch_shapes=[pltpu.VMEM((drp, 128), jnp.float32)],
        ),
        compiler_params=pltpu.CompilerParams(
            dimension_semantics=("parallel", "parallel", "arbitrary"),
            vmem_limit_bytes=vmem_limit),
    )(x, w_eff, b_eff)
    res = out.sum(axis=1)[:, :dr]                   # combine splits, drop pad
    return res.reshape(N, dr, 1, 1).astype(x_nchw.dtype)


# ---------------------------------------------------------------------------
# Main
# ---------------------------------------------------------------------------
if __name__ == "__main__":
    key = jax.random.PRNGKey(0)
    k_x, k_w, k_x2 = jax.random.split(key, 3)

    # Small shapes: N=2, input_dim=16, H=W=12 (HW=144 -> ragged vs 128-tile), dr=8.
    N, C, H, W = 2, 16, 12, 12
    dr = 8
    x = jax.random.normal(k_x, (N, C, H, W), dtype=jnp.float32)

    # --- Path 1: dimension_reduction=None -> pure global average pool -------
    ref_plain = jnp.mean(x, axis=(2, 3), keepdims=True)

    out_auto = gavp_forward(x, params=None)                 # single full HW block
    jax.block_until_ready(out_auto)
    assert out_auto.shape == (N, C, 1, 1)
    assert jnp.allclose(out_auto, ref_plain, atol=1e-5, rtol=1e-5)

    out_tiled = gavp_forward(x, params=None, hw_tile=128)   # 2 tiles, ragged tail
    jax.block_until_ready(out_tiled)
    assert jnp.allclose(out_tiled, ref_plain, atol=1e-5, rtol=1e-5)

    # N == 1 engages the 2-way HW-range split (keeps both v7x TCs busy).
    out_split = gavp_forward(x[:1], params=None, hw_tile=128)
    jax.block_until_ready(out_split)
    assert jnp.allclose(out_split, ref_plain[:1], atol=1e-5, rtol=1e-5)

    # Odd HW-block count + split -> overflow step (clamped DMA, fully masked).
    x_odd = jax.random.normal(k_x2, (1, C, 18, 18), dtype=jnp.float32)
    ref_odd = jnp.mean(x_odd, axis=(2, 3), keepdims=True)
    out_odd = gavp_forward(x_odd, params=None, hw_tile=128)
    jax.block_until_ready(out_odd)
    assert jnp.allclose(out_odd, ref_odd, atol=1e-5, rtol=1e-5)

    # --- Path 2: dimension_reduction=dr -> conv1x1 + BN(eval) + ReLU + pool --
    # Deterministic init mirroring the PyTorch module's _init_weight:
    #   Conv2d: kaiming_normal_, mode='fan_out', relu -> std = sqrt(2 / dr)
    #   BatchNorm2d: weight=1, bias=0, running_mean=0, running_var=1
    conv_w = jax.random.normal(k_w, (dr, C, 1, 1), dtype=jnp.float32) * jnp.sqrt(
        2.0 / dr)
    params = dict(
        conv_w=conv_w,
        bn_gamma=jnp.ones((dr,), jnp.float32),
        bn_beta=jnp.zeros((dr,), jnp.float32),
        bn_mean=jnp.zeros((dr,), jnp.float32),
        bn_var=jnp.ones((dr,), jnp.float32),
        eps=1e-5,
    )

    # Pure-JAX f32 reference.
    w2 = conv_w.reshape(dr, C)
    scale = params["bn_gamma"] / jnp.sqrt(params["bn_var"] + params["eps"])
    y = jnp.einsum("nchw,oc->nohw", x, w2)
    y = y * scale[None, :, None, None] + (
        params["bn_beta"] - params["bn_mean"] * scale)[None, :, None, None]
    y = jnp.maximum(y, 0.0)
    ref_dr = jnp.mean(y, axis=(2, 3), keepdims=True)

    # Exact f32 MXU path.
    out_dr_f32 = gavp_forward(x, params=params, hw_tile=128,
                              prefer_bf16_matmul=False)
    jax.block_until_ready(out_dr_f32)
    assert out_dr_f32.shape == (N, dr, 1, 1)
    assert jnp.allclose(out_dr_f32, ref_dr, atol=1e-4, rtol=1e-4)

    # Default bf16 MXU operands (f32 accumulation) -> looser tolerance.
    out_dr_bf16 = gavp_forward(x, params=params, hw_tile=128)
    jax.block_until_ready(out_dr_bf16)
    assert jnp.allclose(out_dr_bf16, ref_dr, atol=5e-2, rtol=5e-2)

    # dr path with N == 1 -> split across both TensorCores.
    out_dr_split = gavp_forward(x[:1], params=params, hw_tile=128,
                                prefer_bf16_matmul=False)
    jax.block_until_ready(out_dr_split)
    assert jnp.allclose(out_dr_split, ref_dr[:1], atol=1e-4, rtol=1e-4)

    print("KERNEL_OK")
</pallas_src>

<mosaic_0001>
module attributes {stable_mosaic.version = 11 : i64} {
  func.func @_gavp_pool_kernel(%arg0: i32, %arg1: i32, %arg2: i32, %arg3: memref<1x16x144xf32, #tpu.memory_space<vmem>>, %arg4: memref<1x1x16x1xf32, #tpu.memory_space<vmem>>, %arg5: memref<16x128xf32, #tpu.memory_space<vmem>>) attributes {dimension_semantics = [#tpu.dimension_semantics<parallel>, #tpu.dimension_semantics<parallel>, #tpu.dimension_semantics<arbitrary>], iteration_bounds = array<i64: 2, 1, 1>, scalar_prefetch = 0 : i64, scratch_operands = 1 : i64, tpu.core_type = #tpu.core_type<tc>, window_params = [{transform_indices = @transform_0, window_bounds = array<i64: 1, 16, 144>}, {transform_indices = @transform_1, window_bounds = array<i64: 1, 1, 16, 1>}]} {
    %c0_i32 = arith.constant 0 : i32
    %0 = arith.cmpi eq, %arg2, %c0_i32 : i32
    %1 = arith.extui %0 : i1 to i32
    %c0_i32_0 = arith.constant 0 : i32
    %2 = arith.cmpi ne, %1, %c0_i32_0 : i32
    scf.if %2 {
      %cst = arith.constant 0.000000e+00 : f32
      %16 = vector.broadcast %cst : f32 to vector<16x128xf32>
      %c0_15 = arith.constant 0 : index
      %c0_16 = arith.constant 0 : index
      %17 = vector.load %arg5[%c0_15, %c0_16] : memref<16x128xf32, #tpu.memory_space<vmem>>, vector<16x128xf32>
      tpu.vector_store %arg5[%c0_15, %c0_16], %16 {strides = array<i32>} : memref<16x128xf32, #tpu.memory_space<vmem>>, vector<16x128xf32>,
    } else {
    }
    %c0 = arith.constant 0 : index
    %c0_1 = arith.constant 0 : index
    %3 = vector.load %arg5[%c0, %c0_1] : memref<16x128xf32, #tpu.memory_space<vmem>>, vector<16x128xf32>
    %c0_2 = arith.constant 0 : index
    %c0_3 = arith.constant 0 : index
    %c0_4 = arith.constant 0 : index
    %4 = vector.load %arg3[%c0_2, %c0_3, %c0_4] : memref<1x16x144xf32, #tpu.memory_space<vmem>>, vector<1x16x128xf32>
    %5 = vector.shape_cast %4 : vector<1x16x128xf32> to vector<16x128xf32>
    %6 = arith.addf %3, %5 : vector<16x128xf32>
    %c0_5 = arith.constant 0 : index
    %c0_6 = arith.constant 0 : index
    %7 = vector.load %arg5[%c0_5, %c0_6] : memref<16x128xf32, #tpu.memory_space<vmem>>, vector<16x128xf32>
    tpu.vector_store %arg5[%c0_5, %c0_6], %6 {strides = array<i32>} : memref<16x128xf32, #tpu.memory_space<vmem>>, vector<16x128xf32>,
    %c0_7 = arith.constant 0 : index
    %c0_8 = arith.constant 0 : index
    %8 = vector.load %arg5[%c0_7, %c0_8] : memref<16x128xf32, #tpu.memory_space<vmem>>, vector<16x16xf32>
    %c0_9 = arith.constant 0 : index
    %c0_10 = arith.constant 0 : index
    %c128 = arith.constant 128 : index
    %9 = vector.load %arg3[%c0_9, %c0_10, %c128] : memref<1x16x144xf32, #tpu.memory_space<vmem>>, vector<1x16x16xf32>
    %10 = vector.shape_cast %9 : vector<1x16x16xf32> to vector<16x16xf32>
    %11 = arith.addf %8, %10 : vector<16x16xf32>
    %c0_11 = arith.constant 0 : index
    %c0_12 = arith.constant 0 : index
    %12 = vector.load %arg5[%c0_11, %c0_12] : memref<16x128xf32, #tpu.memory_space<vmem>>, vector<16x16xf32>
    tpu.vector_store %arg5[%c0_11, %c0_12], %11 {strides = array<i32>} : memref<16x128xf32, #tpu.memory_space<vmem>>, vector<16x16xf32>,
    %c0_i32_13 = arith.constant 0 : i32
    %13 = arith.cmpi eq, %arg2, %c0_i32_13 : i32
    %14 = arith.extui %13 : i1 to i32
    %c0_i32_14 = arith.constant 0 : i32
    %15 = arith.cmpi ne, %14, %c0_i32_14 : i32
    scf.if %15 {
      %c0_15 = arith.constant 0 : index
      %c0_16 = arith.constant 0 : index
      %16 = vector.load %arg5[%c0_15, %c0_16] : memref<16x128xf32, #tpu.memory_space<vmem>>, vector<16x128xf32>
      %cst = arith.constant dense<0.000000e+00> : vector<16xf32>
      %17 = vector.multi_reduction <add>, %16, %cst [1] : vector<16x128xf32> to vector<16xf32>
      %18 = vector.shape_cast %17 : vector<16xf32> to vector<16x1xf32>
      %cst_17 = arith.constant 0.0069444445 : f32
      %19 = vector.broadcast %cst_17 : f32 to vector<16x1xf32>
      %20 = arith.mulf %18, %19 : vector<16x1xf32>
      %c0_18 = arith.constant 0 : index
      %c0_19 = arith.constant 0 : index
      %c0_20 = arith.constant 0 : index
      %c0_21 = arith.constant 0 : index
      %21 = vector.load %arg4[%c0_18, %c0_19, %c0_20, %c0_21] : memref<1x1x16x1xf32, #tpu.memory_space<vmem>>, vector<1x1x16x1xf32>
      %22 = vector.shape_cast %21 : vector<1x1x16x1xf32> to vector<16x1xf32>
      %23 = vector.shape_cast %20 : vector<16x1xf32> to vector<1x1x16x1xf32>
      tpu.vector_store %arg4[%c0_18, %c0_19, %c0_20, %c0_21], %23 {strides = array<i32>} : memref<1x1x16x1xf32, #tpu.memory_space<vmem>>, vector<1x1x16x1xf32>,
    } else {
    }
    return
  }
  func.func @transform_0(%arg0: i32, %arg1: i32, %arg2: i32) -> (i32, i32, i32) {
    %c1_i32 = arith.constant 1 : i32
    %0 = arith.muli %arg1, %c1_i32 : i32
    %1 = arith.addi %0, %arg2 : i32
    %c0_i32 = arith.constant 0 : i32
    %c0_i32_0 = arith.constant 0 : i32
    return %arg0, %c0_i32, %1 : i32, i32, i32
  }
  func.func @transform_1(%arg0: i32, %arg1: i32, %arg2: i32) -> (i32, i32, i32, i32) {
    %c0_i32 = arith.constant 0 : i32
    %c0_i32_0 = arith.constant 0 : i32
    %c0_i32_1 = arith.constant 0 : i32
    return %arg0, %arg1, %c0_i32, %c0_i32_0 : i32, i32, i32, i32
  }
}

</mosaic_0001>

<bundles_post_ra>
// kernel: tpu_custom_call.1
= control target key start
LH: loop header
LB: loop body
LE: loop exit
PB: predicated region body
PF: predicated region fallthrough
CT: control target
= control target key end

     0   :  { %6 = vsyncpa [#allocation4], 0  ;;  %s606_s0 = inlined_call_operand.hbm [shape: f32[2,16,144], index: 0, kind: input, shape index: {}]   ;;  %s607_s1 = inlined_call_operand.vmem [shape: f32[2,1,16,1], index: 1, kind: output, shape index: {}]  }
   0x1   :  { %8 = vsyncpa [#allocation4 + $0x1], 0  ;;  %s482_s6 = smov 0   ;;  %s484_s7 = smov 0  }
   0x2   :  { %s486_s8 = smov 0   ;;  %s488_s9 = smov 0  }
   0x3   :  { %s490_s10 = smov 0   ;;  %s492_s11 = smov 0  }
   0x4 LB: > { %s314_s12 = sadd.s32 4294967295, %s467_s11   ;;  %s33_s13 = sadd.s32 1, %s463_s10  ;;  %s467_s11 = sphi %s492_s11, %s14_s11   ;;  %s463_s10 = sphi %s490_s10, %s615_s10   ;;  %s459_s9 = sphi %s488_s9, %s614_s9   ;;  %s455_s8 = sphi %s486_s8, %s613_s8   ;;  %s451_s7 = sphi %s484_s7, %s612_s7   ;;  %s447_s6 = sphi %s482_s6, %s611_s6  }
   0x5   : > { %p35_p0 = scmp.ge.s32.totalorder %s33_s13, 2  ;;  %s44_s14 = sadd.s32 1, %s455_s8 }
   0x6   : > { %p51_p1 = scmp.ne.s32.totalorder %s455_s8, %s451_s7  ;;  %p52_p2 = scmp.eq.s32.totalorder %s467_s11, 0 }
   0x7   : > { %s617_s13 = smov (%p35_p0, %s33_s13), 0  ;;  %p57_p4 = scmp.ne.s32.totalorder %s451_s7, %s447_s6 }
   0x8   : > { %p518_p3 = por %p52_p2, %p51_p1  ;;  %s39_s16 = ssub.s32 %s463_s10, %s617_s13 }
   0x9   : > { %p58_p5 = scmp.eq.s32.totalorder %s314_s12, 0  ;;  %p42_p6 = scmp.eq.s32.totalorder %s39_s16, 0 }
   0xa   : > { %p335_p8 = scmp.lt.s32.totalorder %s467_s11, 2  ;;  %s109_s19 = sand.u32 1, %s455_s8  }
   0xb   : > { %p525_p7 = por %p58_p5, %p57_p4  ;;  %s327_s20 = sshll.u32 %s463_s10, 9 }
   0xc   : > { %s531_s18 = scalar_select %p42_p6, %s455_s8, %s44_s14  }
   0xd   : > { %s318_s21 = sshll.u32 %s109_s19, 5  ;;  %s538_s24 = scalar_lea.hbm %s606_s0, %s327_s20 }
   0xe   : > { %s113_s25 = scalar_lea.vmem [#allocation3], %s318_s21  ;;  %p542_p9 = pnand %p335_p8, %p518_p3 }
   0xf   : > { %s123_s26 = sshll.u32 %s113_s25, 4  ;;  %s548_s28 = scalar_lea.sflag [#allocation4], %s109_s19  ;;  %s546_s26 = int_to_ptr.vmem [resolvable:$true] %s123_s26 }
  0x10   : > { %s387_s29 = scalar_lea.hbm %s538_s24, 512  ;;  %p389_p11 = pneg %p542_p9 }
  0x11   : > { %p388_p10 = scmp.ne.s32.totalorder %s538_s24, %s387_s29  ;;  %s392_s3 = scalar_lea.hbm %s606_s0, 1024 }
  0x12   : > { %p393_p0 = scmp.lt.u32.totalorder %s538_s24, %s606_s0  ;;  %p394_p1 = scmp.lt.u32.totalorder %s392_s3, %s387_s29 }
  0x13   : > { %p390_p12 = pnand %p389_p11, %p388_p10  ;;  %p396_p3 = scmp.lt.u32.totalorder %s387_s29, %s538_s24 }
  0x14   : > { %p395_p2 = por %p394_p1, %p393_p0 }
  0x15   : > { %p391_p13 = pneg %p390_p12 }
  0x16   : > { %p397_p4 = por %p396_p3, %p395_p2 }
  0x18   : > { %p398_p5 = pnand %p397_p4, %p391_p13 }
  0x1a   : > { %401 = shalt.err (!%p398_p5)
}
  0x1b   : > { %s402_s6 = scalar_lea.vmem %s546_s26, 512  ;;  %s469_s12 = smov [#allocation3]  }
  0x1c   : > { %p403_p6 = scmp.ne.s32.totalorder %s546_s26, %s402_s6  ;;  %s407_s14 = sshll.u32 %s469_s12, 4  ;;  %s408_s14 = int_to_ptr.vmem [resolvable:$false] %s407_s14 }
  0x1d   : > { %s409_s15 = scalar_lea.vmem %s408_s14, 1024  ;;  %p410_p12 = scmp.lt.s32.totalorder %s546_s26, %s408_s14 }
  0x1e   : > { %p405_p8 = pnand %p403_p6, %p389_p11  ;;  %p411_p0 = scmp.lt.s32.totalorder %s409_s15, %s402_s6 }
  0x20   : > { %p406_p10 = pneg %p405_p8  ;;  %p412_p1 = por %p411_p0, %p410_p12 }
  0x22   : > { %p413_p2 = pnand %p412_p1, %p406_p10 }
  0x24   : > { %416 = shalt.err (!%p413_p2)
}
  0x25   : > { %s470_s16 = smov 256   ;;  %s471_s19 = smov 16  }
  0x26   : > { %334 = dma.hbm_to_vmem [thread:$0]  (!%p542_p9), %s538_s24, 512, %s546_s26, %s548_s28, %s470_s16, %s470_s16, %s471_s19  }
  0x27   : > { %p321_p11 = scmp.ge.s32.totalorder %s467_s11, 1  ;;  %p131_p13 = scmp.lt.s32.totalorder %s467_s11, 3 }
  0x29   : > { %p132_p3 = pnand %p321_p11, %p131_p13 }
  0x2a   : > { %s137_s20 = sand.u32 (!%p132_p3), 1, %s451_s7  }
  0x2b   : > { %135 = sbr.rel (%p132_p3) target bundleno = 211 (0xd3), region = 24  ;;  %s322_s21 = sshll.u32 (!%p132_p3), %s137_s20, 5 }
  0x2c   : > { %s138_s22 = scalar_lea.sflag (!%p132_p3), [#allocation4], %s137_s20  ;;  %s141_s23 = scalar_lea.vmem (!%p132_p3), [#allocation3], %s322_s21 }
  0x32   : > { %442 = dma.done.wait (%p525_p7), %s138_s22, 512  }
  0x33   : > { %444 = vsyncadd (%p525_p7), %s138_s22, 4294966784  ;;  %v183_v0 = vld [vmem:[%s141_s23] sm:$0xff]  ;;  %v191_v1 = vld [vmem:[%s141_s23 + $0x8] sm:$0xff]  ;;  %vm195_vm0 = vcmask 130048   ;;  %p166_p9 = scmp.lt.s32.totalorder %s459_s9, 1  ;;  %vm209_vm1 = vcmask 7168  }
  0x34   : > { %v184_v2 = vld [vmem:[%s141_s23 + $0x10] sm:$0xff]  ;;  %v192_v3 = vld [vmem:[%s141_s23 + $0x18] sm:$0xff]  ;;  %187 = vst [vmem:[#allocation2] sm:$0xff] %v183_v0  ;;  %v193_v4 = vadd.f32 %v191_v1, %v183_v0 }
  0x35   : > { %188 = vst [vmem:[#allocation2 + $0x8] sm:$0xff] %v184_v2  ;;  %v194_v5 = vadd.f32 %v192_v3, %v184_v2  ;;  %s619_s9 = smov (!%p166_p9, %s459_s9), 1 }
  0x36   : > { %196 = vst.msk [vmem:[#allocation2] sm:$0xff] %vm195_vm0, %v193_v4  ;;  %s328_s17 = sshll.u32 %s619_s9, 4 }
  0x37   : > { %197 = vst.msk [vmem:[#allocation2 + $0x8] sm:$0xff] %vm195_vm0, %v194_v5  ;;  %s174_s26 = scalar_lea.vmem %s607_s1, %s328_s17 }
  0x3d   : > { %v201_v6 = vld [vmem:[#allocation2] sm:$0xff] }
  0x3e   : > { %203 = vadd.xlane.f32.xlu0 %v201_v6  ;;  %v202_v7 = vld [vmem:[#allocation2 + $0x8] sm:$0xff] }
  0x42   : > { %205 = vadd.xlane.f32.xlu0 %v202_v7 }
  0xcb   : > { %v204_v8 = vpop.xlane.xlu0 %203 }
  0xcc   : > { %v207_v9 = vmul.f32 0.0069444445, %v204_v8 }
  0xce   : > { %210 = vst.msk [vmem:[%s174_s26] sm:$0xff] %vm209_vm1, %v207_v9 }
  0xcf   : > { %v206_v10 = vpop.xlane.xlu0 %205 }
  0xd0   : > { %v208_v11 = vmul.f32 0.0069444445, %v206_v10 }
  0xd2   : > { %211 = vst.msk [vmem:[%s174_s26 + $0x8] sm:$0xff] %vm209_vm1, %v208_v11 }
  0xd3 PF: > { %s14_s11 = sadd.s32 1, %s467_s11   ;;  %s611_s6 = smov %s451_s7 }
  0xd4   : > { %p11_p7 = scmp.ge.s32.totalorder %s14_s11, 4   ;;  %s612_s7 = smov %s455_s8 }
  0xd5   : > { %s613_s8 = smov %s531_s18  ;;  %s614_s9 = smov %s463_s10 }
  0xd6   : > { %s615_s10 = smov %s617_s13  ;;  %13 = sbr.rel (!%p11_p7) target bundleno = 4 (0x4), region = 72 }
  0xdd   :  { %241 = vsyncpa [#allocation4], 1 }
  0xde   :  { %243 = vsyncpa [#allocation4 + $0x1], 1 }

</bundles_post_ra>
